<compile_context>
chip_gen: v5e
topology: v5e:2x2
jax: 0.10.0
libtpu: 0.0.40
codegen_flags: <defaults>
</compile_context>

<pallas_src>
import functools

import jax
import jax.numpy as jnp
from jax.experimental import pallas as pl
from jax.experimental.pallas import tpu as pltpu


def _chi2_kernel(beta_ref, u_ref, z_ref, o_ref, *, K, C, B_TILE, eps):
    # u_ref, z_ref, o_ref: (B_TILE, C, HW) in VMEM; beta_ref: (1,) in SMEM.
    b0 = beta_ref[0]                       # hoisted scalar read (once per invocation)
    p = K // 2
    for bi in range(B_TILE):               # static unroll over the batch tile
        u_s = u_ref[bi]                    # (C, HW)
        usq = u_s * u_s                    # u ** 2
        # ones-kernel Conv3d over circularly padded C  ==  symmetric K-tap circular sum
        v = usq
        for d in range(1, p + 1):
            v = v + pltpu.roll(usq, d, axis=0)        # usq[(c - d) mod C]
            v = v + pltpu.roll(usq, C - d, axis=0)    # usq[(c + d) mod C]
        std = jax.lax.rsqrt(v + eps)       # 1 / sqrt(v + eps)  (EUP)
        o_ref[bi] = (z_ref[bi] + b0) * std


def _pick_b_tile(N, C, HW, itemsize, *, max_unroll=8, vmem_budget=8 * 1024 * 1024):
    """Largest divisor of N that keeps the (double-buffered) blocks within budget."""
    per_elem = 3 * 2 * C * HW * itemsize          # u, z, out blocks, double-buffered
    cap = max(1, min(max_unroll, vmem_budget // max(per_elem, 1)))
    for bt in range(min(N, cap), 0, -1):
        if N % bt == 0:
            return bt
    return 1


def chi_squared_from_gaussian_1d(z, u, beta, *, kernel_size=3, eps=1e-6):
    """z, u: (N, C, H, W) float32; beta: (1,) float32 (correlated_mean_beta)."""
    N, C, H, W = u.shape
    assert z.shape == u.shape
    assert kernel_size % 2 == 1, "even kernel_size would need an asymmetric halo"
    p = kernel_size // 2
    assert C >= p, "circular pad requires C >= kernel_size // 2"
    HW = H * W

    u3 = u.reshape(N, C, HW)
    z3 = z.reshape(N, C, HW)

    b_tile = _pick_b_tile(N, C, HW, u3.dtype.itemsize)
    grid = (N // b_tile,)

    kern = functools.partial(_chi2_kernel, K=kernel_size, C=C, B_TILE=b_tile, eps=eps)
    out = pl.pallas_call(
        kern,
        out_shape=jax.ShapeDtypeStruct((N, C, HW), z.dtype),
        grid=grid,
        in_specs=[
            pl.BlockSpec(memory_space=pltpu.MemorySpace.SMEM),            # beta scalar
            pl.BlockSpec((b_tile, C, HW), lambda i: (i, 0, 0)),           # u
            pl.BlockSpec((b_tile, C, HW), lambda i: (i, 0, 0)),           # z
        ],
        out_specs=pl.BlockSpec((b_tile, C, HW), lambda i: (i, 0, 0)),
        compiler_params=pltpu.CompilerParams(
            dimension_semantics=("parallel",),
            vmem_limit_bytes=32 * 1024 * 1024,   # safe on v5e/v6e/v7x alike
        ),
    )(beta, u3, z3)
    return out.reshape(N, C, H, W)


def _reference(z, u, beta, kernel_size=3, eps=1e-6):
    N, C, H, W = u.shape
    p = kernel_size // 2
    usq = u ** 2.0
    up = jnp.concatenate([usq[:, C - p:], usq, usq[:, :p]], axis=1)
    v = sum(up[:, k:k + C] for k in range(kernel_size))
    std = 1.0 / jnp.sqrt(v + eps)
    return (z + beta[0]) * std


if __name__ == "__main__":
    # Small shapes consistent with the module: 4-D u/z, NCHW.
    N, C, H, W = 2, 16, 8, 16
    K = 3                      # Conv3d(1, 1, (K, 1, 1), bias=False); nu = K
    mu_init = 1.0
    eps = 1e-6

    key = jax.random.PRNGKey(0)
    kz, ku = jax.random.split(key)
    z = jax.random.normal(kz, (N, C, H, W), dtype=jnp.float32)
    u = jax.random.normal(ku, (N, C, H, W), dtype=jnp.float32)

    # Deterministic parameter init, matching __init__:
    #   correlated_mean_beta = ones(1) * mu_init ; model.weight = ones (baked into K-tap sum)
    beta = jnp.ones((1,), dtype=jnp.float32) * mu_init

    s = chi_squared_from_gaussian_1d(z, u, beta, kernel_size=K, eps=eps)
    s = jax.block_until_ready(s)

    s_ref = _reference(z, u, beta, kernel_size=K, eps=eps)
    assert s.shape == (N, C, H, W)
    assert jnp.allclose(s, s_ref, rtol=1e-5, atol=1e-5), "mismatch vs reference"

    print("KERNEL_OK")
</pallas_src>

<mosaic_0001>
module attributes {stable_mosaic.version = 11 : i64} {
  func.func @_chi2_kernel(%arg0: i32, %arg1: memref<1xf32, #tpu.memory_space<smem>>, %arg2: memref<2x16x128xf32, #tpu.memory_space<vmem>>, %arg3: memref<2x16x128xf32, #tpu.memory_space<vmem>>, %arg4: memref<2x16x128xf32, #tpu.memory_space<vmem>>) attributes {dimension_semantics = [#tpu.dimension_semantics<parallel>], iteration_bounds = array<i64: 1>, scalar_prefetch = 0 : i64, scratch_operands = 0 : i64, tpu.core_type = #tpu.core_type<tc>, window_params = [{transform_indices = @transform_0, window_bounds = array<i64: 1>}, {transform_indices = @transform_1, window_bounds = array<i64: 2, 16, 128>}, {transform_indices = @transform_2, window_bounds = array<i64: 2, 16, 128>}, {transform_indices = @transform_3, window_bounds = array<i64: 2, 16, 128>}]} {
    %c0 = arith.constant 0 : index
    %0 = memref.load %arg1[%c0] : memref<1xf32, #tpu.memory_space<smem>>
    %c0_0 = arith.constant 0 : index
    %c0_1 = arith.constant 0 : index
    %c0_2 = arith.constant 0 : index
    %1 = vector.load %arg2[%c0_0, %c0_1, %c0_2] : memref<2x16x128xf32, #tpu.memory_space<vmem>>, vector<1x16x128xf32>
    %2 = vector.shape_cast %1 : vector<1x16x128xf32> to vector<16x128xf32>
    %3 = arith.mulf %2, %2 : vector<16x128xf32>
    %c1_i32 = arith.constant 1 : i32
    %4 = tpu.dynamic_rotate %3 by %c1_i32 dim 0 : vector<16x128xf32>, i32 -> vector<16x128xf32>
    %5 = arith.addf %3, %4 : vector<16x128xf32>
    %c15_i32 = arith.constant 15 : i32
    %6 = tpu.dynamic_rotate %3 by %c15_i32 dim 0 : vector<16x128xf32>, i32 -> vector<16x128xf32>
    %7 = arith.addf %5, %6 : vector<16x128xf32>
    %cst = arith.constant 9.99999997E-7 : f32
    %8 = vector.broadcast %cst : f32 to vector<16x128xf32>
    %9 = arith.addf %7, %8 : vector<16x128xf32>
    %10 = math.rsqrt %9 : vector<16x128xf32>
    %c0_3 = arith.constant 0 : index
    %c0_4 = arith.constant 0 : index
    %c0_5 = arith.constant 0 : index
    %11 = vector.load %arg3[%c0_3, %c0_4, %c0_5] : memref<2x16x128xf32, #tpu.memory_space<vmem>>, vector<1x16x128xf32>
    %12 = vector.shape_cast %11 : vector<1x16x128xf32> to vector<16x128xf32>
    %13 = vector.broadcast %0 : f32 to vector<16x128xf32>
    %14 = arith.addf %12, %13 : vector<16x128xf32>
    %15 = arith.mulf %14, %10 : vector<16x128xf32>
    %c0_6 = arith.constant 0 : index
    %c0_7 = arith.constant 0 : index
    %c0_8 = arith.constant 0 : index
    %16 = vector.load %arg4[%c0_6, %c0_7, %c0_8] : memref<2x16x128xf32, #tpu.memory_space<vmem>>, vector<1x16x128xf32>
    %17 = vector.shape_cast %16 : vector<1x16x128xf32> to vector<16x128xf32>
    %18 = vector.shape_cast %15 : vector<16x128xf32> to vector<1x16x128xf32>
    tpu.vector_store %arg4[%c0_6, %c0_7, %c0_8], %18 {strides = array<i32>} : memref<2x16x128xf32, #tpu.memory_space<vmem>>, vector<1x16x128xf32>,
    %c1 = arith.constant 1 : index
    %c0_9 = arith.constant 0 : index
    %c0_10 = arith.constant 0 : index
    %19 = vector.load %arg2[%c1, %c0_9, %c0_10] : memref<2x16x128xf32, #tpu.memory_space<vmem>>, vector<1x16x128xf32>
    %20 = vector.shape_cast %19 : vector<1x16x128xf32> to vector<16x128xf32>
    %21 = arith.mulf %20, %20 : vector<16x128xf32>
    %c1_i32_11 = arith.constant 1 : i32
    %22 = tpu.dynamic_rotate %21 by %c1_i32_11 dim 0 : vector<16x128xf32>, i32 -> vector<16x128xf32>
    %23 = arith.addf %21, %22 : vector<16x128xf32>
    %c15_i32_12 = arith.constant 15 : i32
    %24 = tpu.dynamic_rotate %21 by %c15_i32_12 dim 0 : vector<16x128xf32>, i32 -> vector<16x128xf32>
    %25 = arith.addf %23, %24 : vector<16x128xf32>
    %cst_13 = arith.constant 9.99999997E-7 : f32
    %26 = vector.broadcast %cst_13 : f32 to vector<16x128xf32>
    %27 = arith.addf %25, %26 : vector<16x128xf32>
    %28 = math.rsqrt %27 : vector<16x128xf32>
    %c1_14 = arith.constant 1 : index
    %c0_15 = arith.constant 0 : index
    %c0_16 = arith.constant 0 : index
    %29 = vector.load %arg3[%c1_14, %c0_15, %c0_16] : memref<2x16x128xf32, #tpu.memory_space<vmem>>, vector<1x16x128xf32>
    %30 = vector.shape_cast %29 : vector<1x16x128xf32> to vector<16x128xf32>
    %31 = vector.broadcast %0 : f32 to vector<16x128xf32>
    %32 = arith.addf %30, %31 : vector<16x128xf32>
    %33 = arith.mulf %32, %28 : vector<16x128xf32>
    %c1_17 = arith.constant 1 : index
    %c0_18 = arith.constant 0 : index
    %c0_19 = arith.constant 0 : index
    %34 = vector.load %arg4[%c1_17, %c0_18, %c0_19] : memref<2x16x128xf32, #tpu.memory_space<vmem>>, vector<1x16x128xf32>
    %35 = vector.shape_cast %34 : vector<1x16x128xf32> to vector<16x128xf32>
    %36 = vector.shape_cast %33 : vector<16x128xf32> to vector<1x16x128xf32>
    tpu.vector_store %arg4[%c1_17, %c0_18, %c0_19], %36 {strides = array<i32>} : memref<2x16x128xf32, #tpu.memory_space<vmem>>, vector<1x16x128xf32>,
    return
  }
  func.func @transform_0(%arg0: i32) -> i32 {
    %c0_i32 = arith.constant 0 : i32
    %c0_i32_0 = arith.constant 0 : i32
    return %c0_i32 : i32
  }
  func.func @transform_1(%arg0: i32) -> (i32, i32, i32) {
    %c0_i32 = arith.constant 0 : i32
    %c0_i32_0 = arith.constant 0 : i32
    %c0_i32_1 = arith.constant 0 : i32
    return %arg0, %c0_i32, %c0_i32_0 : i32, i32, i32
  }
  func.func @transform_2(%arg0: i32) -> (i32, i32, i32) {
    %c0_i32 = arith.constant 0 : i32
    %c0_i32_0 = arith.constant 0 : i32
    %c0_i32_1 = arith.constant 0 : i32
    return %arg0, %c0_i32, %c0_i32_0 : i32, i32, i32
  }
  func.func @transform_3(%arg0: i32) -> (i32, i32, i32) {
    %c0_i32 = arith.constant 0 : i32
    %c0_i32_0 = arith.constant 0 : i32
    %c0_i32_1 = arith.constant 0 : i32
    return %arg0, %c0_i32, %c0_i32_0 : i32, i32, i32
  }
}

</mosaic_0001>

<bundles_post_ra>
// kernel: tpu_custom_call.1
= control target key start
LH: loop header
LB: loop body
LE: loop exit
PB: predicated region body
PF: predicated region fallthrough
CT: control target
= control target key end

     0   :  { %9 = vsyncpa [#allocation4], 0  ;;  %s334_s0 = inlined_call_operand.<no memory space> [shape: f32[1], index: 0, kind: input, shape index: {}]   ;;  %s335_s1 = inlined_call_operand.hbm [shape: f32[2,16,128], index: 1, kind: input, shape index: {}]   ;;  %s336_s2 = inlined_call_operand.hbm [shape: f32[2,16,128], index: 2, kind: input, shape index: {}]   ;;  %s337_s3 = inlined_call_operand.hbm [shape: f32[2,16,128], index: 3, kind: output, shape index: {}]  }
   0x1   :  { %10 = vsyncpa [#allocation7], 0 }
   0x2   :  { %11 = vsyncpa [#allocation5], 0  ;;  %s18_s14 = sshll.u32 %s335_s1, 4  ;;  %s260_s15 = smov [#allocation3]   ;;  %s19_s14 = int_to_ptr.hbm [resolvable:$true] %s18_s14 }
   0x3   :  { %s20_s16 = sshll.u32 %s260_s15, 4  ;;  %s31_s19 = sshll.u32 %s336_s2, 4  ;;  %s21_s16 = int_to_ptr.vmem [resolvable:$true] %s20_s16  ;;  %s32_s19 = int_to_ptr.hbm [resolvable:$true] %s31_s19 }
   0x4   :  { %s261_s20 = smov 128   ;;  %s262_s21 = smov 8  }
   0x5   :  { %26 = dma.hbm_to_vmem [thread:$0]  %s19_s14, 512, %s21_s16, [#allocation4], %s261_s20, %s261_s20, %s262_s21  }
   0x6   :  { %s263_s22 = smov [#allocation6]  }
   0x7   :  { %s33_s23 = sshll.u32 %s263_s22, 4  ;;  %s34_s23 = int_to_ptr.vmem [resolvable:$true] %s33_s23 }
   0x8   :  { %39 = dma.hbm_to_vmem [thread:$0]  %s32_s19, 512, %s34_s23, [#allocation7], %s261_s20, %s261_s20, %s262_s21  }
   0x9   :  { %254 = dma.done.wait [#allocation4], 512  }
   0xa   :  { %255 = vsyncadd [#allocation4], 4294966784 }
   0xb   :  { %256 = dma.done.wait [#allocation7], 512  }
   0xc   :  { %257 = vsyncadd [#allocation7], 4294966784  ;;  %v55_v0 = vlaneseq  ;;  %v49_v2 = vld [vmem:[#allocation3] sm:$0xff]  ;;  %v50_v3 = vld [vmem:[#allocation3 + $0x8] sm:$0xff]  ;;  %v93_v42 = vstv %s334_s0  ;;  %s264_s0 = smov [#allocation8]   ;;  %s155_s27 = sshll.u32 %s337_s3, 4  ;;  %s156_s27 = int_to_ptr.hbm [resolvable:$true] %s155_s27 }
   0xd   :  { %v51_v4 = vmul.f32 %v49_v2, %v49_v2  ;;  %v52_v5 = vmul.f32 %v50_v3, %v50_v3  ;;  %v101_v6 = vld [vmem:[#allocation3 + $0x10] sm:$0xff]  ;;  %v102_v7 = vld [vmem:[#allocation3 + $0x18] sm:$0xff]  ;;  %v91_v41 = vld [vmem:[#allocation6] sm:$0xff]  ;;  %s153_s24 = sshll.u32 %s264_s0, 4  ;;  %s154_s24 = int_to_ptr.vmem [resolvable:$true] %s153_s24 }
   0xe   :  { %v56_v1 = vshrl.u32 %v55_v0, 7  ;;  %v103_v8 = vmul.f32 %v101_v6, %v101_v6  ;;  %v104_v9 = vmul.f32 %v102_v7, %v102_v7  ;;  %v94_v48 = vadd.f32 %v93_v42, %v91_v41  ;;  %v92_v54 = vld [vmem:[#allocation6 + $0x8] sm:$0xff]  ;;  %v140_v58 = vld [vmem:[#allocation6 + $0x10] sm:$0xff]  ;;  %v141_v62 = vld [vmem:[#allocation6 + $0x18] sm:$0xff] }
   0xf   :  { %v53_v10 = vrot.slane %v51_v4, 7  ;;  %v54_v11 = vrot.slane %v52_v5, 7  ;;  %v62_v12 = vrot.slane %v51_v4, 1  ;;  %v63_v13 = vrot.slane %v52_v5, 1 }
  0x10   :  { %vm57_vm0 = vcmp.lt.s32.totalorder %v56_v1, 1  ;;  %vm64_vm1 = vcmp.lt.s32.totalorder %v56_v1, 7  ;;  %v105_v14 = vrot.slane %v103_v8, 7  ;;  %v106_v15 = vrot.slane %v104_v9, 7 }
  0x11   :  { %v111_v16 = vrot.slane %v103_v8, 1  ;;  %v112_v17 = vrot.slane %v104_v9, 1  ;;  %v59_v18 = vsel %vm57_vm0, %v54_v11, %v53_v10  ;;  %v65_v19 = vsel %vm64_vm1, %v62_v12, %v63_v13 }
  0x12   :  { %v58_v20 = vsel %vm57_vm0, %v53_v10, %v54_v11  ;;  %v66_v21 = vsel %vm64_vm1, %v63_v13, %v62_v12  ;;  %v60_v22 = vadd.f32 %v59_v18, %v51_v4  ;;  %v108_v24 = vsel %vm57_vm0, %v106_v15, %v105_v14 }
  0x13   :  { %v61_v23 = vadd.f32 %v58_v20, %v52_v5  ;;  %v113_v25 = vsel %vm64_vm1, %v111_v16, %v112_v17  ;;  %v109_v26 = vadd.f32 %v108_v24, %v103_v8  ;;  %v107_v27 = vsel %vm57_vm0, %v105_v14, %v106_v15 }
  0x14   :  { %v114_v28 = vsel %vm64_vm1, %v112_v17, %v111_v16  ;;  %v67_v29 = vadd.f32 %v65_v19, %v60_v22  ;;  %v110_v31 = vadd.f32 %v107_v27, %v104_v9  ;;  %v95_v1 = vadd.f32 %v93_v42, %v92_v54 }
  0x15   :  { %v68_v30 = vadd.f32 %v66_v21, %v61_v23  ;;  %v115_v32 = vadd.f32 %v113_v25, %v109_v26  ;;  %v142_v5 = vadd.f32 %v140_v58, %v93_v42  ;;  %v143_v9 = vadd.f32 %v141_v62, %v93_v42 }
  0x16   :  { %v69_v33 = vadd.f32 1e-06, %v67_v29  ;;  %v116_v35 = vadd.f32 %v114_v28, %v110_v31 }
  0x17   :  { %v70_v34 = vadd.f32 1e-06, %v68_v30  ;;  %v117_v36 = vadd.f32 1e-06, %v115_v32 }
  0x18   :  { %174 = vrsqrt.f32 %v69_v33  ;;  %v118_v37 = vadd.f32 1e-06, %v116_v35  ;;  %vm77_vm2 = vweird.f32 %v69_v33 }
  0x19   :  { %176 = vrsqrt.f32 %v70_v34  ;;  %vm87_vm4 = vweird.f32 %v70_v34  ;;  %vm125_vm6 = vweird.f32 %v117_v36 }
  0x1a   :  { %178 = vrsqrt.f32 %v117_v36  ;;  %vm135_vm9 = vweird.f32 %v118_v37 }
  0x1b   :  { %180 = vrsqrt.f32 %v118_v37 }
  0x1e   :  { %v175_v38 = vpop.eup %174 }
  0x1f   :  { %v177_v39 = vpop.eup %176  ;;  %v72_v40 = vmul.f32 %v175_v38, %v69_v33  ;;  %vm78_vm3 = vweird.f32 %v175_v38 }
  0x20   :  { %v179_v43 = vpop.eup %178  ;;  %v82_v44 = vmul.f32 %v177_v39, %v70_v34  ;;  %vm88_vm5 = vweird.f32 %v177_v39  ;;  %vm308_vm8 = vmor %vm77_vm2, %vm78_vm3 }
  0x21   :  { %v181_v45 = vpop.eup %180  ;;  %v73_v46 = vmul.f32 %v175_v38, %v72_v40  ;;  %v120_v47 = vmul.f32 %v179_v43, %v117_v36  ;;  %vm126_vm7 = vweird.f32 %v179_v43  ;;  %vm314_vm11 = vmor %vm87_vm4, %vm88_vm5 }
  0x22   :  { %v83_v49 = vmul.f32 %v177_v39, %v82_v44  ;;  %v130_v50 = vmul.f32 %v181_v45, %v118_v37  ;;  %vm136_vm10 = vweird.f32 %v181_v45  ;;  %vm318_vm12 = vmor %vm125_vm6, %vm126_vm7 }
  0x23   :  { %v74_v51 = vmul.f32 0.5, %v73_v46  ;;  %v121_v52 = vmul.f32 %v179_v43, %v120_v47  ;;  %vm137_vm13 = vmor %vm135_vm9, %vm136_vm10 }
  0x24   :  { %v84_v53 = vmul.f32 0.5, %v83_v49  ;;  %v131_v55 = vmul.f32 %v181_v45, %v130_v50 }
  0x25   :  { %v75_v56 = vsub.f32 1.5, %v74_v51  ;;  %v122_v57 = vmul.f32 0.5, %v121_v52 }
  0x26   :  { %v85_v60 = vsub.f32 1.5, %v84_v53  ;;  %v132_v61 = vmul.f32 0.5, %v131_v55 }
  0x27   :  { %v76_v63 = vmul.f32 %v175_v38, %v75_v56  ;;  %v123_v2 = vsub.f32 1.5, %v122_v57 }
  0x28   :  { %v86_v3 = vmul.f32 %v177_v39, %v85_v60  ;;  %v133_v6 = vsub.f32 1.5, %v132_v61 }
  0x29   :  { %v80_v7 = vsel %vm308_vm8, %v175_v38, %v76_v63  ;;  %v124_v8 = vmul.f32 %v179_v43, %v123_v2 }
  0x2a   :  { %v96_v10 = vmul.f32 %v94_v48, %v80_v7  ;;  %v90_v11 = vsel %vm314_vm11, %v177_v39, %v86_v3  ;;  %v134_v12 = vmul.f32 %v181_v45, %v133_v6 }
  0x2b   :  { %v97_v13 = vmul.f32 %v95_v1, %v90_v11  ;;  %v128_v14 = vsel %vm318_vm12, %v179_v43, %v124_v8 }
  0x2c   :  { %98 = vst [vmem:[#allocation8] sm:$0xff] %v96_v10  ;;  %v144_v15 = vmul.f32 %v142_v5, %v128_v14  ;;  %v138_v16 = vsel %vm137_vm13, %v181_v45, %v134_v12 }
  0x2d   :  { %99 = vst [vmem:[#allocation8 + $0x8] sm:$0xff] %v97_v13  ;;  %v145_v17 = vmul.f32 %v143_v9, %v138_v16 }
  0x2e   :  { %147 = vst [vmem:[#allocation8 + $0x10] sm:$0xff] %v144_v15 }
  0x2f   :  { %148 = vst [vmem:[#allocation8 + $0x18] sm:$0xff] %v145_v17 }
  0x30   :  { %161 = dma.vmem_to_hbm [thread:$0]  %s154_s24, 512, %s156_s27, [#allocation5], %s261_s20, %s261_s20, %s262_s21  }
  0x31   :  { %258 = dma.done.wait [#allocation5], 512  }
  0x32   :  { %259 = vsyncadd [#allocation5], 4294966784 }
  0x33   :  { %166 = vsyncpa [#allocation4], 1 }
  0x34   :  { %167 = vsyncpa [#allocation7], 1 }
  0x35   :  { %168 = vsyncpa [#allocation5], 1 }

</bundles_post_ra>
